<compile_context>
chip_gen: v5e
topology: v5e:2x2
jax: 0.10.0
libtpu: 0.0.40
codegen_flags: <defaults>
</compile_context>

<pallas_src>
import functools

import jax
import jax.numpy as jnp
from jax import lax
from jax.experimental import pallas as pl
from jax.experimental.pallas import tpu as pltpu

LN_EPS = 1e-12


def _bert_embeddings_kernel(ids_ref, wtab_hbm, pos_ref, gamma_ref, beta_ref,
                            out_ref, row_buf, sem, *, seq_len, tile, chunk):
    s = pl.program_id(0)
    b = pl.program_id(1)
    seq_base = b * seq_len + s * tile
    n_chunks = tile // chunk

    def issue_chunk(c):                       # c is a static Python int
        row0 = c * chunk
        for r in range(chunk):                # static unroll -> LLO sees the issue ramp
            tok = ids_ref[seq_base + (row0 + r)]
            pltpu.make_async_copy(
                wtab_hbm.at[pl.ds(tok, 1), :],
                row_buf.at[pl.ds(row0 + r, 1), :],
                sem.at[c],
            ).start()

    def wait_chunk(c):
        # All `chunk` row copies of this chunk signal sem[c]; DMA semaphores count
        # bytes, so one aggregate wait with a (chunk, H) descriptor covers them all.
        pltpu.make_async_copy(
            wtab_hbm.at[pl.ds(0, chunk), :],          # shape-compatible dummy source
            row_buf.at[pl.ds(c * chunk, chunk), :],
            sem.at[c],
        ).wait()

    gamma = gamma_ref[...]
    beta = beta_ref[...]

    issue_chunk(0)
    for c in range(n_chunks):                 # static, small (<= tile // 8)
        if c + 1 < n_chunks:
            issue_chunk(c + 1)                # overlap next chunk's DMAs with this LN
        wait_chunk(c)
        row0 = c * chunk
        # ---- sum with (position + token-type) slab, then BertLayerNorm (f32) ----
        emb = (row_buf[pl.ds(row0, chunk), :].astype(jnp.float32)
               + pos_ref[pl.ds(row0, chunk), :])
        u = jnp.mean(emb, axis=-1, keepdims=True)
        ctr = emb - u
        var = jnp.mean(ctr * ctr, axis=-1, keepdims=True)
        x = ctr * lax.rsqrt(var + LN_EPS)
        out_ref[pl.ds(row0, chunk), :] = (gamma * x + beta).astype(out_ref.dtype)


def _pick_seq_tile(S, cap=512):
    if S <= cap:
        return S
    for ts in (512, 384, 256, 128, 64, 32, 16, 8):
        if ts <= cap and S % ts == 0:
            return ts
    return S  # fallback: full extent


def _pick_chunk(tile):
    for c in (32, 16, 8, 4, 2):
        if tile % c == 0:
            return c
    return tile


def bert_embeddings(params, input_ids, token_type=None, full_masker=False,
                    out_dtype=None):
    """Pallas-backed BertEmbeddings.forward for token_type in (None, 'prompt')."""
    B, S = input_ids.shape
    wtab = params['word_embeddings']
    H = wtab.shape[1]
    wdtype = jnp.dtype(wtab.dtype)
    out_dtype = jnp.dtype(out_dtype) if out_dtype is not None else wdtype

    # Position ids: one row, shared by all batch elements (matches PyTorch flow).
    pos_row = jnp.arange(S, dtype=jnp.int32)
    if token_type is None and full_masker:
        pos_row = pos_row.at[S // 2:].set(pos_row[: S // 2] + 1)

    if token_type == 'prompt':
        type_table = params['prompt_embedding']
    else:
        type_table = params['token_type_embeddings']

    # Pre-gather the (S, H) positional slab in XLA (tiny) and fold in the (constant)
    # token-type row (token_type_ids are all zeros in this forward path). Kept f32.
    pos_slab = (jnp.take(params['position_embeddings'], pos_row, axis=0)
                + type_table[0][None, :]).astype(jnp.float32)

    ids_flat = input_ids.reshape(B * S).astype(jnp.int32)
    gamma = params['ln_weight'].reshape(1, H).astype(jnp.float32)
    beta = params['ln_bias'].reshape(1, H).astype(jnp.float32)

    tile = _pick_seq_tile(S)
    chunk = _pick_chunk(tile)
    n_chunks = tile // chunk
    grid = (S // tile, B)   # batch innermost -> pos+type slab block reused across b

    kernel = functools.partial(_bert_embeddings_kernel,
                               seq_len=S, tile=tile, chunk=chunk)

    # VMEM budget from actual dtypes: double-buffered pos / out tiles, gather scratch,
    # constants, plus headroom. Clamped well under v7x's 64 MiB physical VMEM.
    wbytes = wdtype.itemsize
    obytes = out_dtype.itemsize
    est = (2 * tile * H * 4          # pos+type slab tile (f32), double-buffered
           + 2 * tile * H * obytes   # output tile, double-buffered
           + tile * H * wbytes       # word-row gather scratch
           + 4 * H * 4               # gamma / beta
           + (2 << 20))              # headroom (compiler scratch, descriptors)
    vmem_limit = int(min(max(est, 8 << 20), 48 << 20))

    out = pl.pallas_call(
        kernel,
        out_shape=jax.ShapeDtypeStruct((B, S, H), out_dtype),
        grid_spec=pltpu.PrefetchScalarGridSpec(
            num_scalar_prefetch=1,
            grid=grid,
            in_specs=[
                pl.BlockSpec(memory_space=pl.ANY),                   # word table (HBM)
                pl.BlockSpec((tile, H), lambda s, b, ids: (s, 0)),   # pos+type slab
                pl.BlockSpec((1, H), lambda s, b, ids: (0, 0)),      # gamma (resident)
                pl.BlockSpec((1, H), lambda s, b, ids: (0, 0)),      # beta  (resident)
            ],
            out_specs=pl.BlockSpec((pl.Squeezed(), tile, H),
                                   lambda s, b, ids: (b, s, 0)),
            scratch_shapes=[
                pltpu.VMEM((tile, H), wdtype),          # gathered word rows
                pltpu.SemaphoreType.DMA((n_chunks,)),   # one DMA sem per chunk
            ],
        ),
        compiler_params=pltpu.CompilerParams(
            dimension_semantics=("parallel", "parallel"),
            vmem_limit_bytes=vmem_limit,
        ),
    )(ids_flat, wtab, pos_slab, gamma, beta)

    return out


def ref_bert_embeddings(params, input_ids, token_type=None, full_masker=False):
    """Pure-JAX reference of the PyTorch forward (eval mode)."""
    B, S = input_ids.shape
    position_ids = jnp.arange(S, dtype=jnp.int32)
    if token_type is None and full_masker:
        position_ids = position_ids.at[S // 2:].set(position_ids[: S // 2] + 1)
    position_ids = jnp.broadcast_to(position_ids[None, :], (B, S))
    if token_type == 'prompt':
        type_table = params['prompt_embedding']
    else:
        type_table = params['token_type_embeddings']
    words = jnp.take(params['word_embeddings'], input_ids, axis=0)
    posemb = jnp.take(params['position_embeddings'], position_ids, axis=0)
    ttemb = jnp.take(type_table, jnp.zeros_like(input_ids), axis=0)
    emb = words + posemb + ttemb
    u = jnp.mean(emb, axis=-1, keepdims=True)
    s = jnp.mean((emb - u) ** 2, axis=-1, keepdims=True)
    x = (emb - u) / jnp.sqrt(s + LN_EPS)
    return params['ln_weight'] * x + params['ln_bias']


def init_params(key, vocab_size, hidden_size, max_position_embeddings, type_vocab_size):
    k1, k2, k3, k4 = jax.random.split(key, 4)
    scale = 0.02
    return {
        'word_embeddings': scale * jax.random.normal(k1, (vocab_size, hidden_size), jnp.float32),
        'position_embeddings': scale * jax.random.normal(k2, (max_position_embeddings, hidden_size), jnp.float32),
        'token_type_embeddings': scale * jax.random.normal(k3, (type_vocab_size, hidden_size), jnp.float32),
        'prompt_embedding': scale * jax.random.normal(k4, (1, hidden_size), jnp.float32),
        'ln_weight': jnp.ones((hidden_size,), jnp.float32),
        'ln_bias': jnp.zeros((hidden_size,), jnp.float32),
    }


if __name__ == "__main__":
    # small config: vocab=64, hidden=32, max_pos=16, type_vocab=2; batch=2, seq=8
    VOCAB, HIDDEN, MAX_POS, TYPE_VOCAB = 64, 32, 16, 2
    B, S = 2, 8

    key = jax.random.PRNGKey(0)
    kp, ki = jax.random.split(key)
    params = init_params(kp, VOCAB, HIDDEN, MAX_POS, TYPE_VOCAB)
    input_ids = jax.random.randint(ki, (B, S), 0, VOCAB, dtype=jnp.int32)

    # default path (output dtype follows the parameter dtype, here f32)
    out = bert_embeddings(params, input_ids, token_type=None, full_masker=False)
    out = jax.block_until_ready(out)
    ref = ref_bert_embeddings(params, input_ids, token_type=None, full_masker=False)
    assert out.shape == (B, S, HIDDEN)
    assert jnp.allclose(out, ref, atol=1e-5, rtol=1e-5), "mismatch vs pure-JAX reference"

    # full_masker path (exercises the position-id remap)
    out_fm = bert_embeddings(params, input_ids, token_type=None, full_masker=True)
    out_fm = jax.block_until_ready(out_fm)
    ref_fm = ref_bert_embeddings(params, input_ids, token_type=None, full_masker=True)
    assert jnp.allclose(out_fm, ref_fm, atol=1e-5, rtol=1e-5), "mismatch (full_masker)"

    # bf16 activation output path (LN in f32, cast only at the store)
    out_bf16 = bert_embeddings(params, input_ids, out_dtype=jnp.bfloat16)
    out_bf16 = jax.block_until_ready(out_bf16)
    assert out_bf16.dtype == jnp.bfloat16
    assert jnp.allclose(out_bf16.astype(jnp.float32), ref, atol=5e-2, rtol=5e-2), \
        "mismatch (bf16 output)"

    print("KERNEL_OK")
</pallas_src>

<mosaic_0001>
module attributes {stable_mosaic.version = 11 : i64} {
  func.func @_bert_embeddings_kernel(%arg0: i32, %arg1: i32, %arg2: memref<16xi32, #tpu.memory_space<smem>>, %arg3: memref<64x32xf32, #tpu.memory_space<any>>, %arg4: memref<8x32xf32, #tpu.memory_space<vmem>>, %arg5: memref<1x32xf32, #tpu.memory_space<vmem>>, %arg6: memref<1x32xf32, #tpu.memory_space<vmem>>, %arg7: memref<1x8x32xf32, #tpu.memory_space<vmem>>, %arg8: memref<8x32xf32, #tpu.memory_space<vmem>>, %arg9: memref<1x!tpu.dma_semaphore, #tpu.memory_space<semaphore_mem>>) attributes {dimension_semantics = [#tpu.dimension_semantics<parallel>, #tpu.dimension_semantics<parallel>], iteration_bounds = array<i64: 1, 2>, scalar_prefetch = 1 : i64, scratch_operands = 2 : i64, tpu.core_type = #tpu.core_type<tc>, window_params = [{}, {transform_indices = @transform_1, window_bounds = array<i64: 8, 32>}, {pipeline_mode = #tpu.pipeline_mode<synchronous>, transform_indices = @transform_2, window_bounds = array<i64: 1, 32>}, {pipeline_mode = #tpu.pipeline_mode<synchronous>, transform_indices = @transform_3, window_bounds = array<i64: 1, 32>}, {transform_indices = @transform_4, window_bounds = array<i64: 1, 8, 32>}]} {
    %c8_i32 = arith.constant 8 : i32
    %0 = arith.muli %arg1, %c8_i32 : i32
    %c8_i32_0 = arith.constant 8 : i32
    %1 = arith.muli %arg0, %c8_i32_0 : i32
    %2 = arith.addi %0, %1 : i32
    %c0 = arith.constant 0 : index
    %c0_1 = arith.constant 0 : index
    %3 = vector.load %arg5[%c0, %c0_1] : memref<1x32xf32, #tpu.memory_space<vmem>>, vector<1x32xf32>
    %c0_2 = arith.constant 0 : index
    %c0_3 = arith.constant 0 : index
    %4 = vector.load %arg6[%c0_2, %c0_3] : memref<1x32xf32, #tpu.memory_space<vmem>>, vector<1x32xf32>
    %c0_i32 = arith.constant 0 : i32
    %5 = arith.addi %2, %c0_i32 : i32
    %6 = arith.index_cast %5 : i32 to index
    %7 = memref.load %arg2[%6] : memref<16xi32, #tpu.memory_space<smem>>
    %c0_i32_4 = arith.constant 0 : i32
    %c0_i32_5 = arith.constant 0 : i32
    %8 = tpu.memref_slice %arg3[%7, %c0_i32_5] : memref<64x32xf32, #tpu.memory_space<any>> -> memref<1x32xf32, #tpu.memory_space<any>>
    %c0_i32_6 = arith.constant 0 : i32
    %c0_i32_7 = arith.constant 0 : i32
    %9 = tpu.memref_slice %arg8[%c0_i32_6, %c0_i32_7] : memref<8x32xf32, #tpu.memory_space<vmem>> -> memref<1x32xf32, #tpu.memory_space<vmem>>
    %10 = tpu.memref_slice %arg9[%c0_i32_4] : memref<1x!tpu.dma_semaphore, #tpu.memory_space<semaphore_mem>> -> memref<1x!tpu.dma_semaphore, #tpu.memory_space<semaphore_mem>>
    %11 = tpu.memref_squeeze %10 : memref<1x!tpu.dma_semaphore, #tpu.memory_space<semaphore_mem>> -> memref<!tpu.dma_semaphore, #tpu.memory_space<semaphore_mem>>
    tpu.enqueue_dma source(%8 : memref<1x32xf32, #tpu.memory_space<any>>) target(%9 : memref<1x32xf32, #tpu.memory_space<vmem>>) target_semaphore(%11 : memref<!tpu.dma_semaphore, #tpu.memory_space<semaphore_mem>>)
    %c1_i32 = arith.constant 1 : i32
    %12 = arith.addi %2, %c1_i32 : i32
    %13 = arith.index_cast %12 : i32 to index
    %14 = memref.load %arg2[%13] : memref<16xi32, #tpu.memory_space<smem>>
    %c0_i32_8 = arith.constant 0 : i32
    %c0_i32_9 = arith.constant 0 : i32
    %15 = tpu.memref_slice %arg3[%14, %c0_i32_9] : memref<64x32xf32, #tpu.memory_space<any>> -> memref<1x32xf32, #tpu.memory_space<any>>
    %c1_i32_10 = arith.constant 1 : i32
    %c0_i32_11 = arith.constant 0 : i32
    %16 = tpu.memref_slice %arg8[%c1_i32_10, %c0_i32_11] : memref<8x32xf32, #tpu.memory_space<vmem>> -> memref<1x32xf32, #tpu.memory_space<vmem>>
    %17 = tpu.memref_slice %arg9[%c0_i32_8] : memref<1x!tpu.dma_semaphore, #tpu.memory_space<semaphore_mem>> -> memref<1x!tpu.dma_semaphore, #tpu.memory_space<semaphore_mem>>
    %18 = tpu.memref_squeeze %17 : memref<1x!tpu.dma_semaphore, #tpu.memory_space<semaphore_mem>> -> memref<!tpu.dma_semaphore, #tpu.memory_space<semaphore_mem>>
    tpu.enqueue_dma source(%15 : memref<1x32xf32, #tpu.memory_space<any>>) target(%16 : memref<1x32xf32, #tpu.memory_space<vmem>>) target_semaphore(%18 : memref<!tpu.dma_semaphore, #tpu.memory_space<semaphore_mem>>)
    %c2_i32 = arith.constant 2 : i32
    %19 = arith.addi %2, %c2_i32 : i32
    %20 = arith.index_cast %19 : i32 to index
    %21 = memref.load %arg2[%20] : memref<16xi32, #tpu.memory_space<smem>>
    %c0_i32_12 = arith.constant 0 : i32
    %c0_i32_13 = arith.constant 0 : i32
    %22 = tpu.memref_slice %arg3[%21, %c0_i32_13] : memref<64x32xf32, #tpu.memory_space<any>> -> memref<1x32xf32, #tpu.memory_space<any>>
    %c2_i32_14 = arith.constant 2 : i32
    %c0_i32_15 = arith.constant 0 : i32
    %23 = tpu.memref_slice %arg8[%c2_i32_14, %c0_i32_15] : memref<8x32xf32, #tpu.memory_space<vmem>> -> memref<1x32xf32, #tpu.memory_space<vmem>>
    %24 = tpu.memref_slice %arg9[%c0_i32_12] : memref<1x!tpu.dma_semaphore, #tpu.memory_space<semaphore_mem>> -> memref<1x!tpu.dma_semaphore, #tpu.memory_space<semaphore_mem>>
    %25 = tpu.memref_squeeze %24 : memref<1x!tpu.dma_semaphore, #tpu.memory_space<semaphore_mem>> -> memref<!tpu.dma_semaphore, #tpu.memory_space<semaphore_mem>>
    tpu.enqueue_dma source(%22 : memref<1x32xf32, #tpu.memory_space<any>>) target(%23 : memref<1x32xf32, #tpu.memory_space<vmem>>) target_semaphore(%25 : memref<!tpu.dma_semaphore, #tpu.memory_space<semaphore_mem>>)
    %c3_i32 = arith.constant 3 : i32
    %26 = arith.addi %2, %c3_i32 : i32
    %27 = arith.index_cast %26 : i32 to index
    %28 = memref.load %arg2[%27] : memref<16xi32, #tpu.memory_space<smem>>
    %c0_i32_16 = arith.constant 0 : i32
    %c0_i32_17 = arith.constant 0 : i32
    %29 = tpu.memref_slice %arg3[%28, %c0_i32_17] : memref<64x32xf32, #tpu.memory_space<any>> -> memref<1x32xf32, #tpu.memory_space<any>>
    %c3_i32_18 = arith.constant 3 : i32
    %c0_i32_19 = arith.constant 0 : i32
    %30 = tpu.memref_slice %arg8[%c3_i32_18, %c0_i32_19] : memref<8x32xf32, #tpu.memory_space<vmem>> -> memref<1x32xf32, #tpu.memory_space<vmem>>
    %31 = tpu.memref_slice %arg9[%c0_i32_16] : memref<1x!tpu.dma_semaphore, #tpu.memory_space<semaphore_mem>> -> memref<1x!tpu.dma_semaphore, #tpu.memory_space<semaphore_mem>>
    %32 = tpu.memref_squeeze %31 : memref<1x!tpu.dma_semaphore, #tpu.memory_space<semaphore_mem>> -> memref<!tpu.dma_semaphore, #tpu.memory_space<semaphore_mem>>
    tpu.enqueue_dma source(%29 : memref<1x32xf32, #tpu.memory_space<any>>) target(%30 : memref<1x32xf32, #tpu.memory_space<vmem>>) target_semaphore(%32 : memref<!tpu.dma_semaphore, #tpu.memory_space<semaphore_mem>>)
    %c4_i32 = arith.constant 4 : i32
    %33 = arith.addi %2, %c4_i32 : i32
    %34 = arith.index_cast %33 : i32 to index
    %35 = memref.load %arg2[%34] : memref<16xi32, #tpu.memory_space<smem>>
    %c0_i32_20 = arith.constant 0 : i32
    %c0_i32_21 = arith.constant 0 : i32
    %36 = tpu.memref_slice %arg3[%35, %c0_i32_21] : memref<64x32xf32, #tpu.memory_space<any>> -> memref<1x32xf32, #tpu.memory_space<any>>
    %c4_i32_22 = arith.constant 4 : i32
    %c0_i32_23 = arith.constant 0 : i32
    %37 = tpu.memref_slice %arg8[%c4_i32_22, %c0_i32_23] : memref<8x32xf32, #tpu.memory_space<vmem>> -> memref<1x32xf32, #tpu.memory_space<vmem>>
    %38 = tpu.memref_slice %arg9[%c0_i32_20] : memref<1x!tpu.dma_semaphore, #tpu.memory_space<semaphore_mem>> -> memref<1x!tpu.dma_semaphore, #tpu.memory_space<semaphore_mem>>
    %39 = tpu.memref_squeeze %38 : memref<1x!tpu.dma_semaphore, #tpu.memory_space<semaphore_mem>> -> memref<!tpu.dma_semaphore, #tpu.memory_space<semaphore_mem>>
    tpu.enqueue_dma source(%36 : memref<1x32xf32, #tpu.memory_space<any>>) target(%37 : memref<1x32xf32, #tpu.memory_space<vmem>>) target_semaphore(%39 : memref<!tpu.dma_semaphore, #tpu.memory_space<semaphore_mem>>)
    %c5_i32 = arith.constant 5 : i32
    %40 = arith.addi %2, %c5_i32 : i32
    %41 = arith.index_cast %40 : i32 to index
    %42 = memref.load %arg2[%41] : memref<16xi32, #tpu.memory_space<smem>>
    %c0_i32_24 = arith.constant 0 : i32
    %c0_i32_25 = arith.constant 0 : i32
    %43 = tpu.memref_slice %arg3[%42, %c0_i32_25] : memref<64x32xf32, #tpu.memory_space<any>> -> memref<1x32xf32, #tpu.memory_space<any>>
    %c5_i32_26 = arith.constant 5 : i32
    %c0_i32_27 = arith.constant 0 : i32
    %44 = tpu.memref_slice %arg8[%c5_i32_26, %c0_i32_27] : memref<8x32xf32, #tpu.memory_space<vmem>> -> memref<1x32xf32, #tpu.memory_space<vmem>>
    %45 = tpu.memref_slice %arg9[%c0_i32_24] : memref<1x!tpu.dma_semaphore, #tpu.memory_space<semaphore_mem>> -> memref<1x!tpu.dma_semaphore, #tpu.memory_space<semaphore_mem>>
    %46 = tpu.memref_squeeze %45 : memref<1x!tpu.dma_semaphore, #tpu.memory_space<semaphore_mem>> -> memref<!tpu.dma_semaphore, #tpu.memory_space<semaphore_mem>>
    tpu.enqueue_dma source(%43 : memref<1x32xf32, #tpu.memory_space<any>>) target(%44 : memref<1x32xf32, #tpu.memory_space<vmem>>) target_semaphore(%46 : memref<!tpu.dma_semaphore, #tpu.memory_space<semaphore_mem>>)
    %c6_i32 = arith.constant 6 : i32
    %47 = arith.addi %2, %c6_i32 : i32
    %48 = arith.index_cast %47 : i32 to index
    %49 = memref.load %arg2[%48] : memref<16xi32, #tpu.memory_space<smem>>
    %c0_i32_28 = arith.constant 0 : i32
    %c0_i32_29 = arith.constant 0 : i32
    %50 = tpu.memref_slice %arg3[%49, %c0_i32_29] : memref<64x32xf32, #tpu.memory_space<any>> -> memref<1x32xf32, #tpu.memory_space<any>>
    %c6_i32_30 = arith.constant 6 : i32
    %c0_i32_31 = arith.constant 0 : i32
    %51 = tpu.memref_slice %arg8[%c6_i32_30, %c0_i32_31] : memref<8x32xf32, #tpu.memory_space<vmem>> -> memref<1x32xf32, #tpu.memory_space<vmem>>
    %52 = tpu.memref_slice %arg9[%c0_i32_28] : memref<1x!tpu.dma_semaphore, #tpu.memory_space<semaphore_mem>> -> memref<1x!tpu.dma_semaphore, #tpu.memory_space<semaphore_mem>>
    %53 = tpu.memref_squeeze %52 : memref<1x!tpu.dma_semaphore, #tpu.memory_space<semaphore_mem>> -> memref<!tpu.dma_semaphore, #tpu.memory_space<semaphore_mem>>
    tpu.enqueue_dma source(%50 : memref<1x32xf32, #tpu.memory_space<any>>) target(%51 : memref<1x32xf32, #tpu.memory_space<vmem>>) target_semaphore(%53 : memref<!tpu.dma_semaphore, #tpu.memory_space<semaphore_mem>>)
    %c7_i32 = arith.constant 7 : i32
    %54 = arith.addi %2, %c7_i32 : i32
    %55 = arith.index_cast %54 : i32 to index
    %56 = memref.load %arg2[%55] : memref<16xi32, #tpu.memory_space<smem>>
    %c0_i32_32 = arith.constant 0 : i32
    %c0_i32_33 = arith.constant 0 : i32
    %57 = tpu.memref_slice %arg3[%56, %c0_i32_33] : memref<64x32xf32, #tpu.memory_space<any>> -> memref<1x32xf32, #tpu.memory_space<any>>
    %c7_i32_34 = arith.constant 7 : i32
    %c0_i32_35 = arith.constant 0 : i32
    %58 = tpu.memref_slice %arg8[%c7_i32_34, %c0_i32_35] : memref<8x32xf32, #tpu.memory_space<vmem>> -> memref<1x32xf32, #tpu.memory_space<vmem>>
    %59 = tpu.memref_slice %arg9[%c0_i32_32] : memref<1x!tpu.dma_semaphore, #tpu.memory_space<semaphore_mem>> -> memref<1x!tpu.dma_semaphore, #tpu.memory_space<semaphore_mem>>
    %60 = tpu.memref_squeeze %59 : memref<1x!tpu.dma_semaphore, #tpu.memory_space<semaphore_mem>> -> memref<!tpu.dma_semaphore, #tpu.memory_space<semaphore_mem>>
    tpu.enqueue_dma source(%57 : memref<1x32xf32, #tpu.memory_space<any>>) target(%58 : memref<1x32xf32, #tpu.memory_space<vmem>>) target_semaphore(%60 : memref<!tpu.dma_semaphore, #tpu.memory_space<semaphore_mem>>)
    %c0_i32_36 = arith.constant 0 : i32
    %c0_i32_37 = arith.constant 0 : i32
    %c0_i32_38 = arith.constant 0 : i32
    %61 = tpu.memref_slice %arg3[%c0_i32_37, %c0_i32_38] : memref<64x32xf32, #tpu.memory_space<any>> -> memref<8x32xf32, #tpu.memory_space<any>>
    %c0_i32_39 = arith.constant 0 : i32
    %c0_i32_40 = arith.constant 0 : i32
    %62 = tpu.memref_slice %arg8[%c0_i32_39, %c0_i32_40] : memref<8x32xf32, #tpu.memory_space<vmem>> -> memref<8x32xf32, #tpu.memory_space<vmem>>
    %63 = tpu.memref_slice %arg9[%c0_i32_36] : memref<1x!tpu.dma_semaphore, #tpu.memory_space<semaphore_mem>> -> memref<1x!tpu.dma_semaphore, #tpu.memory_space<semaphore_mem>>
    %64 = tpu.memref_squeeze %63 : memref<1x!tpu.dma_semaphore, #tpu.memory_space<semaphore_mem>> -> memref<!tpu.dma_semaphore, #tpu.memory_space<semaphore_mem>>
    tpu.wait_dma2 semaphore(%64 : memref<!tpu.dma_semaphore, #tpu.memory_space<semaphore_mem>>) src(%61 : memref<8x32xf32, #tpu.memory_space<any>>) dst(%62 : memref<8x32xf32, #tpu.memory_space<vmem>>)
    %c0_41 = arith.constant 0 : index
    %c0_42 = arith.constant 0 : index
    %65 = vector.load %arg8[%c0_41, %c0_42] : memref<8x32xf32, #tpu.memory_space<vmem>>, vector<8x32xf32>
    %c0_43 = arith.constant 0 : index
    %c0_44 = arith.constant 0 : index
    %66 = vector.load %arg4[%c0_43, %c0_44] : memref<8x32xf32, #tpu.memory_space<vmem>>, vector<8x32xf32>
    %67 = arith.addf %65, %66 : vector<8x32xf32>
    %cst = arith.constant dense<0.000000e+00> : vector<8xf32>
    %68 = vector.multi_reduction <add>, %67, %cst [1] : vector<8x32xf32> to vector<8xf32>
    %69 = vector.shape_cast %68 : vector<8xf32> to vector<8x1xf32>
    %cst_45 = arith.constant 3.200000e+01 : f32
    %70 = vector.broadcast %cst_45 : f32 to vector<8x1xf32>
    %71 = arith.divf %69, %70 : vector<8x1xf32>
    %72 = vector.broadcast %71 : vector<8x1xf32> to vector<8x32xf32>
    %73 = arith.subf %67, %72 : vector<8x32xf32>
    %74 = arith.mulf %73, %73 : vector<8x32xf32>
    %cst_46 = arith.constant dense<0.000000e+00> : vector<8xf32>
    %75 = vector.multi_reduction <add>, %74, %cst_46 [1] : vector<8x32xf32> to vector<8xf32>
    %76 = vector.shape_cast %75 : vector<8xf32> to vector<8x1xf32>
    %cst_47 = arith.constant 3.200000e+01 : f32
    %77 = vector.broadcast %cst_47 : f32 to vector<8x1xf32>
    %78 = arith.divf %76, %77 : vector<8x1xf32>
    %cst_48 = arith.constant 9.99999996E-13 : f32
    %79 = vector.broadcast %cst_48 : f32 to vector<8x1xf32>
    %80 = arith.addf %78, %79 : vector<8x1xf32>
    %81 = math.rsqrt %80 : vector<8x1xf32>
    %82 = vector.broadcast %81 : vector<8x1xf32> to vector<8x32xf32>
    %83 = arith.mulf %73, %82 : vector<8x32xf32>
    %84 = vector.broadcast %3 : vector<1x32xf32> to vector<8x32xf32>
    %85 = arith.mulf %84, %83 : vector<8x32xf32>
    %86 = vector.broadcast %4 : vector<1x32xf32> to vector<8x32xf32>
    %87 = arith.addf %85, %86 : vector<8x32xf32>
    %c0_49 = arith.constant 0 : index
    %c0_50 = arith.constant 0 : index
    %c0_51 = arith.constant 0 : index
    %88 = vector.load %arg7[%c0_49, %c0_50, %c0_51] : memref<1x8x32xf32, #tpu.memory_space<vmem>>, vector<1x8x32xf32>
    %89 = vector.shape_cast %88 : vector<1x8x32xf32> to vector<8x32xf32>
    %90 = vector.shape_cast %87 : vector<8x32xf32> to vector<1x8x32xf32>
    tpu.vector_store %arg7[%c0_49, %c0_50, %c0_51], %90 {strides = array<i32>} : memref<1x8x32xf32, #tpu.memory_space<vmem>>, vector<1x8x32xf32>,
    return
  }
  func.func @transform_1(%arg0: i32, %arg1: i32, %arg2: memref<16xi32, #tpu.memory_space<smem>>) -> (i32, i32) {
    %c0_i32 = arith.constant 0 : i32
    %c0_i32_0 = arith.constant 0 : i32
    return %arg0, %c0_i32 : i32, i32
  }
  func.func @transform_2(%arg0: i32, %arg1: i32, %arg2: memref<16xi32, #tpu.memory_space<smem>>) -> (i32, i32) {
    %c0_i32 = arith.constant 0 : i32
    %c0_i32_0 = arith.constant 0 : i32
    %c0_i32_1 = arith.constant 0 : i32
    return %c0_i32, %c0_i32_0 : i32, i32
  }
  func.func @transform_3(%arg0: i32, %arg1: i32, %arg2: memref<16xi32, #tpu.memory_space<smem>>) -> (i32, i32) {
    %c0_i32 = arith.constant 0 : i32
    %c0_i32_0 = arith.constant 0 : i32
    %c0_i32_1 = arith.constant 0 : i32
    return %c0_i32, %c0_i32_0 : i32, i32
  }
  func.func @transform_4(%arg0: i32, %arg1: i32, %arg2: memref<16xi32, #tpu.memory_space<smem>>) -> (i32, i32, i32) {
    %c0_i32 = arith.constant 0 : i32
    %c0_i32_0 = arith.constant 0 : i32
    return %arg1, %arg0, %c0_i32 : i32, i32, i32
  }
}

</mosaic_0001>

<bundles_post_ra>
// kernel: tpu_custom_call.1
= control target key start
LH: loop header
LB: loop body
LE: loop exit
PB: predicated region body
PF: predicated region fallthrough
CT: control target
= control target key end

     0   :  { %s845_s21 = smov [#allocation5]   ;;  %s1033_s0 = inlined_call_operand.vmem [shape: s32[16], index: 0, kind: input, shape index: {}]   ;;  %s1034_s1 = inlined_call_operand.vmem [shape: f32[64,32], index: 1, kind: input, shape index: {}]   ;;  %s1035_s2 = inlined_call_operand.vmem [shape: f32[8,32], index: 2, kind: input, shape index: {}]   ;;  %s1036_s3 = inlined_call_operand.vmem [shape: f32[1,32], index: 3, kind: input, shape index: {}]   ;;  %s1037_s4 = inlined_call_operand.vmem [shape: f32[1,32], index: 4, kind: input, shape index: {}]   ;;  %s1038_s5 = inlined_call_operand.hbm [shape: f32[2,8,32], index: 5, kind: output, shape index: {}]  }
   0x1   :  { %s11_s20 = sshll.u32 %s1033_s0, 4  ;;  %s12_s20 = int_to_ptr.vmem [resolvable:$true] %s11_s20 }
   0x2   :  { %14 = dma.vmem_to_smem %s12_s20, 16, %s845_s21, [#allocation4] }
   0x3   :  { %813 = dma.done.wait [#allocation4], 16 }
   0x4   :  { %814 = vsyncadd [#allocation4], 4294967280 }
   0x5   :  { %17 = sfence }
   0x6   :  { %18 = vsyncpa [#allocation7], 0 }
   0x7   :  { %20 = vsyncpa [#allocation7 + $0x1], 0  ;;  %s880_s22 = smov 0   ;;  %s882_s23 = smov 0  }
   0x8   :  { %s884_s24 = smov 0   ;;  %s886_s25 = smov 0  }
   0x9   :  { %s888_s26 = smov 0   ;;  %s890_s27 = smov 0  }
   0xa LB: > { %s676_s0 = sadd.s32 4294967295, %s843_s27   ;;  %s677_s28 = sadd.s32 4294967294, %s843_s27   ;;  %s843_s27 = sphi %s890_s27, %s26_s27   ;;  %s839_s26 = sphi %s888_s26, %s1045_s26   ;;  %s835_s25 = sphi %s886_s25, %s1044_s25   ;;  %s831_s24 = sphi %s884_s24, %s1043_s24   ;;  %s827_s23 = sphi %s882_s23, %s1042_s23   ;;  %s823_s22 = sphi %s880_s22, %s1041_s22  }
   0xb   : > { %s35_s29 = sadd.s32 1, %s839_s26  ;;  %s115_s30 = sadd.s32 1, %s831_s24 }
   0xc   : > { %p36_p0 = scmp.ge.s32.totalorder %s35_s29, 2  ;;  %p125_p1 = scmp.ne.s32.totalorder %s831_s24, %s827_s23 }
   0xd   : > { %p126_p2 = scmp.eq.s32.totalorder %s676_s0, 1  ;;  %p131_p3 = scmp.ne.s32.totalorder %s827_s23, %s823_s22 }
   0xe   : > { %s1047_s29 = smov (%p36_p0, %s35_s29), 0  ;;  %p132_p5 = scmp.eq.s32.totalorder %s677_s28, 1 }
   0xf   : > { %p918_p4 = por %p126_p2, %p125_p1  ;;  %s110_s7 = ssub.s32 %s839_s26, %s1047_s29 }
  0x10   : > { %p680_p6 = scmp.ge.s32.totalorder %s843_s27, 1  ;;  %p113_p7 = scmp.eq.s32.totalorder %s110_s7, 0 }
  0x11   : > { %p925_p8 = por %p132_p5, %p131_p3  ;;  %p163_p9 = scmp.lt.s32.totalorder %s843_s27, 3 }
  0x12   : > { %s931_s9 = scalar_select %p113_p7, %s831_s24, %s115_s30  }
  0x13   : > { %p164_p10 = pnand %p680_p6, %p163_p9 }
  0x14   : > { %s183_s10 = sand.u32 (!%p164_p10), 1, %s827_s23   ;;  %s934_s11 = sshll.u32 (!%p164_p10), %s835_s25, 3 }
  0x15   : > { %167 = sbr.rel (%p164_p10) target bundleno = 381 (0x17d), region = 32  ;;  %s948_s16 = sshll.u32 (!%p164_p10), %s183_s10, 3 }
  0x16   : > { %s195_s17 = sld [smem:[#allocation5 + %s934_s11]] (!%p164_p10)  ;;  %s185_s21 = scalar_lea.vmem (!%p164_p10), [#allocation6], %s948_s16 }
  0x1a   : > { %v939_v0 = vld [vmem:[%s1036_s3] sm:$0x1] }
  0x1b   : > { %v944_v1 = vld [vmem:[%s1037_s4] sm:$0x1] }
  0x1c   : > { %s196_s20 = scalar_lea.vmem %s1034_s1, %s195_s17 }
  0x1d   : > { %v211_v2 = vld [vmem:[%s196_s20] sm:$0x1] }
  0x1e   : > { %212 = vst [vmem:[#allocation2] sm:$0x1] %v211_v2 }
  0x1f   : > { %230 = vsyncadd [#allocation3], 16  ;;  %s231_s25 = sadd.s32 1, %s934_s11 }
  0x20   : > { %s232_s0 = sld [smem:[#allocation5 + %s231_s25]] }
  0x26   : > { %s233_s7 = scalar_lea.vmem %s1034_s1, %s232_s0 }
  0x27   : > { %v249_v3 = vld [vmem:[%s233_s7] sm:$0x1] }
  0x28   : > { %250 = vst [vmem:[#allocation2 + $0x1] sm:$0x1] %v249_v3 }
  0x29   : > { %268 = vsyncadd [#allocation3], 16  ;;  %s269_s12 = sadd.s32 2, %s934_s11 }
  0x2a   : > { %s270_s13 = sld [smem:[#allocation5 + %s269_s12]] }
  0x30   : > { %s271_s17 = scalar_lea.vmem %s1034_s1, %s270_s13 }
  0x31   : > { %v287_v4 = vld [vmem:[%s271_s17] sm:$0x1] }
  0x32   : > { %288 = vst [vmem:[#allocation2 + $0x2] sm:$0x1] %v287_v4 }
  0x33   : > { %306 = vsyncadd [#allocation3], 16  ;;  %s307_s18 = sadd.s32 3, %s934_s11 }
  0x34   : > { %s308_s19 = sld [smem:[#allocation5 + %s307_s18]] }
  0x3a   : > { %s309_s0 = scalar_lea.vmem %s1034_s1, %s308_s19 }
  0x3b   : > { %v325_v5 = vld [vmem:[%s309_s0] sm:$0x1] }
  0x3c   : > { %326 = vst [vmem:[#allocation2 + $0x3] sm:$0x1] %v325_v5 }
  0x3d   : > { %344 = vsyncadd [#allocation3], 16  ;;  %s345_s28 = sadd.s32 4, %s934_s11 }
  0x3e   : > { %s346_s30 = sld [smem:[#allocation5 + %s345_s28]] }
  0x44   : > { %s347_s13 = scalar_lea.vmem %s1034_s1, %s346_s30 }
  0x45   : > { %v363_v6 = vld [vmem:[%s347_s13] sm:$0x1] }
  0x46   : > { %364 = vst [vmem:[#allocation2 + $0x4] sm:$0x1] %v363_v6 }
  0x47   : > { %382 = vsyncadd [#allocation3], 16  ;;  %s383_s14 = sadd.s32 5, %s934_s11 }
  0x48   : > { %s384_s15 = sld [smem:[#allocation5 + %s383_s14]] }
  0x4e   : > { %s385_s19 = scalar_lea.vmem %s1034_s1, %s384_s15 }
  0x4f   : > { %v401_v7 = vld [vmem:[%s385_s19] sm:$0x1] }
  0x50   : > { %402 = vst [vmem:[#allocation2 + $0x5] sm:$0x1] %v401_v7 }
  0x51   : > { %420 = vsyncadd [#allocation3], 16  ;;  %s421_s20 = sadd.s32 6, %s934_s11 }
  0x52   : > { %s422_s25 = sld [smem:[#allocation5 + %s421_s20]] }
  0x58   : > { %s423_s30 = scalar_lea.vmem %s1034_s1, %s422_s25 }
  0x59   : > { %v439_v8 = vld [vmem:[%s423_s30] sm:$0x1] }
  0x5a   : > { %440 = vst [vmem:[#allocation2 + $0x6] sm:$0x1] %v439_v8 }
  0x5b   : > { %458 = vsyncadd [#allocation3], 16  ;;  %s459_s7 = sadd.s32 7, %s934_s11 }
  0x5c   : > { %s460_s12 = sld [smem:[#allocation5 + %s459_s7]] }
  0x62   : > { %s461_s15 = scalar_lea.vmem %s1034_s1, %s460_s12 }
  0x63   : > { %v477_v9 = vld [vmem:[%s461_s15] sm:$0x1] }
  0x64   : > { %478 = vst [vmem:[#allocation2 + $0x7] sm:$0x1] %v477_v9 }
  0x65   : > { %496 = vsyncadd [#allocation3], 16 }
  0x66   : > { %815 = dma.done.wait [#allocation3], 128 }
  0x67   : > { %816 = vsyncadd [#allocation3], 4294967168  ;;  %v501_v11 = vld [vmem:[%s1035_s2] sm:$0xff]  ;;  %vm503_vm0 = vcmask 261120   ;;  %v846_v14 = vmov 32.0   ;;  %v534_v35 = vperm.slane %v939_v0, 0  ;;  %s554_s25 = scalar_lea.hbm %s1038_s5, %s934_s11 }
  0x68   : > { %745 = vrcp.f32 %v846_v14  ;;  %v538_v38 = vperm.slane %v944_v1, 0  ;;  %s556_s0 = sshll.u32 %s185_s21, 4  ;;  %s558_s28 = sshll.u32 %s554_s25, 4  ;;  %s557_s0 = int_to_ptr.vmem [resolvable:$true] %s556_s0  ;;  %s559_s28 = int_to_ptr.hbm [resolvable:$true] %s558_s28 }
  0x69   : > { %s543_s30 = scalar_lea.sflag [#allocation7], %s183_s10  ;;  %s775_s7 = sshra.s32 %s559_s28, 4  ;;  %s776_s7 = int_to_ptr.hbm [resolvable:$true] %s775_s7 }
  0x6a   : > { %s777_s11 = scalar_lea.hbm %s776_s7, 8  ;;  %s781_s14 = scalar_lea.hbm %s1038_s5, 16 }
  0x6b   : > { %v500_v10 = vld [vmem:[#allocation2] sm:$0xff]  ;;  %p778_p11 = scmp.ne.s32.totalorder %s776_s7, %s777_s11  ;;  %p782_p0 = scmp.lt.s32.totalorder %s776_s7, %s1038_s5 }
  0x6c   : > { %v502_v12 = vadd.f32 %v501_v11, %v500_v10  ;;  %p783_p1 = scmp.lt.s32.totalorder %s781_s14, %s777_s11 }
  0x6d   : > { %p779_p12 = pnand %p778_p11, %p918_p4 }
  0x6e   : > { %v504_v13 = vsel %vm503_vm0, %v502_v12, 0.0  ;;  %v746_v15 = vpop.eup %745  ;;  %p784_p2 = por %p783_p1, %p782_p0 }
  0x6f   : > { %505 = vadd.xlane.f32.xlu0 %v504_v13  ;;  %v508_v16 = vmul.f32 32.0, %v746_v15  ;;  %vm512_vm1 = vweird.f32 %v746_v15  ;;  %p780_p13 = pneg %p779_p12 }
  0x71   : > { %v509_v17 = vsub.f32 1.0, %v508_v16  ;;  %p785_p3 = pnand %p784_p2, %p780_p13 }
  0x73   : > { %v510_v18 = vmul.f32 %v746_v15, %v509_v17 }
  0x75   : > { %v511_v19 = vadd.f32 %v746_v15, %v510_v18 }
  0x77   : > { %v513_v20 = vsel %vm512_vm1, %v746_v15, %v511_v19 }
  0xe2   : > { %v506_v21 = vpop.xlane.xlu0 %505 }
  0xe3   : > { %v514_v22 = vmul.f32 %v513_v20, %v506_v21 }
  0xe5   : > { %v515_v23 = vsub.f32 %v502_v12, %v514_v22 }
  0xe7   : > { %v516_v24 = vmul.f32 %v515_v23, %v515_v23 }
  0xe9   : > { %v517_v25 = vsel %vm503_vm0, %v516_v24, 0.0 }
  0xea   : > { %518 = vadd.xlane.f32.xlu0 %v517_v25 }
 0x15d   : > { %v519_v26 = vpop.xlane.xlu0 %518 }
 0x15e   : > { %v520_v27 = vmul.f32 %v519_v26, %v513_v20 }
 0x160   : > { %v521_v28 = vadd.f32 1e-12, %v520_v27 }
 0x162   : > { %747 = vrsqrt.f32 %v521_v28  ;;  %vm528_vm3 = vweird.f32 %v521_v28 }
 0x168   : > { %v748_v29 = vpop.eup %747 }
 0x169   : > { %v523_v30 = vmul.f32 %v748_v29, %v521_v28  ;;  %vm529_vm2 = vweird.f32 %v748_v29 }
 0x16a   : > { %vm530_vm4 = vmor %vm528_vm3, %vm529_vm2 }
 0x16b   : > { %v524_v31 = vmul.f32 %v748_v29, %v523_v30 }
 0x16d   : > { %v525_v32 = vmul.f32 0.5, %v524_v31 }
 0x16f   : > { %v526_v33 = vsub.f32 1.5, %v525_v32 }
 0x171   : > { %v527_v34 = vmul.f32 %v748_v29, %v526_v33 }
 0x173   : > { %v531_v36 = vsel %vm530_vm4, %v748_v29, %v527_v34 }
 0x174   : > { %v532_v37 = vmul.f32 %v531_v36, %v515_v23 }
 0x176   : > { %v536_v39 = vmul.f32 %v534_v35, %v532_v37 }
 0x178   : > { %v540_v40 = vadd.f32 %v538_v38, %v536_v39 }
 0x17a   : > { %541 = vst.msk [vmem:[%s185_s21] sm:$0xff] %vm503_vm0, %v540_v40 }
 0x17b   : > { %788 = shalt.err (!%p785_p3)
}
 0x17c   : > { %688 = dma.vmem_to_hbm [thread:$0]  (%p918_p4), %s557_s0, 128, %s559_s28, %s543_s30  }
 0x17d PF: > { %p694_p5 = scmp.ge.s32.totalorder %s843_s27, 2  ;;  %s570_s10 = sand.u32 1, %s823_s22  }
 0x17e   : > { %s571_s16 = scalar_lea.sflag [#allocation7], %s570_s10 }
 0x17f   : > { %p691_p6 = pnand %p694_p5, %p925_p8 }
 0x181   : > { %p692_p7 = pneg %p691_p6 }
 0x183   : > { %818 = dma.done.wait (%p692_p7), %s571_s16, 128  }
 0x184   : > { %820 = vsyncadd (%p692_p7), %s571_s16, 4294967168  ;;  %s26_s27 = sadd.s32 1, %s843_s27   ;;  %s1041_s22 = smov %s827_s23 }
 0x185   : > { %p23_p9 = scmp.ge.s32.totalorder %s26_s27, 4   ;;  %s1042_s23 = smov %s831_s24 }
 0x186   : > { %s1043_s24 = smov %s931_s9  ;;  %s1044_s25 = smov %s839_s26 }
 0x187   : > { %s1045_s26 = smov %s1047_s29  ;;  %25 = sbr.rel (!%p23_p9) target bundleno = 10 (0xa), region = 354 }
 0x18c   :  { %577 = vsyncpa [#allocation7], 1 }
 0x18d   :  { %579 = vsyncpa [#allocation7 + $0x1], 1 }
 0x18e   :  { %580 = vsyncmov [#allocation3] }
 0x191   :  { %s581_s6 = vpop.sfrf %580 }
 0x192   :  { %p687_p4 = scmp.ne.s32.totalorder %s581_s6, 0 }
 0x194   :  { %585 = shalt.err (%p687_p4)  }

</bundles_post_ra>
